<compile_context>
chip_gen: v7x
topology: tpu7x:2x2x1
jax: 0.10.0
libtpu: 0.0.40
codegen_flags: <defaults>
</compile_context>

<pallas_src>
import math
import functools

import jax
import jax.numpy as jnp
from jax.experimental import pallas as pl
from jax.experimental.pallas import tpu as pltpu


def _mhsa_kernel(x_ref, gamma_ref, beta_ref, wq_ref, wk_ref, wv_ref, wo_ref,
                 bout_ref, o_ref, xn_scr, k_scr, v_scr, acc_scr, *, scale):
    qt = pl.program_id(1)
    h = pl.program_id(2)
    num_heads = pl.num_programs(2)

    cdtype = xn_scr.dtype            # compute dtype == input dtype (bf16 or f32)
    tq = acc_scr.shape[0]            # query-tile length

    # ---- LayerNorm of the full sequence, once per batch element ----
    # (f32 statistics, eps=1e-5 to match torch.nn.LayerNorm)
    @pl.when((qt == 0) & (h == 0))
    def _():
        xf = x_ref[0].astype(jnp.float32)                         # (N, D)
        mean = jnp.mean(xf, axis=-1, keepdims=True)
        var = jnp.mean((xf - mean) ** 2, axis=-1, keepdims=True)
        xn = (xf - mean) * jax.lax.rsqrt(var + 1e-5)
        xn = (xn * gamma_ref[...].astype(jnp.float32)
              + beta_ref[...].astype(jnp.float32))
        xn_scr[...] = xn.astype(cdtype)

    # ---- K/V projection for this head, once per batch element ----
    # (cached in VMEM, reused by every query tile)
    @pl.when(qt == 0)
    def _():
        xn = xn_scr[...]                                          # (N, D)
        k_scr[h] = jnp.dot(xn, wk_ref[0],
                           preferred_element_type=jnp.float32).astype(cdtype)
        v_scr[h] = jnp.dot(xn, wv_ref[0],
                           preferred_element_type=jnp.float32).astype(cdtype)

    # ---- zero the output-projection accumulator at the start of a head sweep ----
    @pl.when(h == 0)
    def _():
        acc_scr[...] = jnp.zeros_like(acc_scr)

    # ---- attention for (query tile qt, head h) ----
    q_start = pl.multiple_of(qt * tq, tq)
    xq = xn_scr[pl.ds(q_start, tq), :]                            # (tq, D)
    q = jnp.dot(xq, wq_ref[0], preferred_element_type=jnp.float32)  # (tq, hd)
    q = (q * scale).astype(cdtype)
    k = k_scr[h]                                                  # (N, hd)
    v = v_scr[h]                                                  # (N, hd)

    # scores: contract last dims of both operands -> no materialized transpose
    s = jax.lax.dot_general(q, k, (((1,), (1,)), ((), ())),
                            preferred_element_type=jnp.float32)   # (tq, N)
    m = jnp.max(s, axis=-1, keepdims=True)
    e = jnp.exp(s - m)
    denom = jnp.sum(e, axis=-1, keepdims=True)
    p = (e * pl.reciprocal(denom, approx=True)).astype(cdtype)    # (tq, N)
    # attention dropout is identity in eval mode.

    ctx = jnp.dot(p, v, preferred_element_type=jnp.float32).astype(cdtype)  # (tq, hd)
    # per-head slice of the output projection; accumulate over heads.
    acc_scr[...] += jnp.dot(ctx, wo_ref[0], preferred_element_type=jnp.float32)

    # ---- last head: add bias, cast, write the output tile ----
    @pl.when(h == num_heads - 1)
    def _():
        o_ref[0] = (acc_scr[...]
                    + bout_ref[...].astype(jnp.float32)).astype(o_ref.dtype)


def _pick_tq(n):
    """Largest 'nice' query tile (multiple of 8, <=256) that divides n."""
    for cand in (256, 128, 64, 32, 16, 8):
        if n % cand == 0:
            return cand
    return n


def conformer_attention(x, gamma, beta, wqkv, wout, bout, *, num_heads):
    """x: (B, N, D) -> (B, N, D).  wqkv: (D, 3D), wout: (D, D) (x @ W layout)."""
    B, N, D = x.shape
    assert D % num_heads == 0
    H = num_heads
    hd = D // H

    # Pre-split weights per head outside the kernel (free layout work):
    #   q_h = xn @ wq[h];  k_h = xn @ wk[h];  v_h = xn @ wv[h]
    #   final = sum_h ctx_h @ wo[h] + bout
    wq = wqkv[:, 0 * D:1 * D].reshape(D, H, hd).transpose(1, 0, 2)  # (H, D, hd)
    wk = wqkv[:, 1 * D:2 * D].reshape(D, H, hd).transpose(1, 0, 2)  # (H, D, hd)
    wv = wqkv[:, 2 * D:3 * D].reshape(D, H, hd).transpose(1, 0, 2)  # (H, D, hd)
    wo = wout.reshape(H, hd, D)                                      # (H, hd, D)

    tq = _pick_tq(N)
    n_qt = N // tq

    kernel = functools.partial(_mhsa_kernel, scale=1.0 / math.sqrt(hd))

    return pl.pallas_call(
        kernel,
        out_shape=jax.ShapeDtypeStruct((B, N, D), x.dtype),
        grid=(B, n_qt, H),
        in_specs=[
            pl.BlockSpec((1, N, D), lambda b, qt, h: (b, 0, 0)),     # x (full seq)
            pl.BlockSpec((1, D), lambda b, qt, h: (0, 0)),           # ln gamma
            pl.BlockSpec((1, D), lambda b, qt, h: (0, 0)),           # ln beta
            pl.BlockSpec((1, D, hd), lambda b, qt, h: (h, 0, 0)),    # W_q head h
            pl.BlockSpec((1, D, hd), lambda b, qt, h: (h, 0, 0)),    # W_k head h
            pl.BlockSpec((1, D, hd), lambda b, qt, h: (h, 0, 0)),    # W_v head h
            pl.BlockSpec((1, hd, D), lambda b, qt, h: (h, 0, 0)),    # W_out rows of head h
            pl.BlockSpec((1, D), lambda b, qt, h: (0, 0)),           # b_out
        ],
        out_specs=pl.BlockSpec((1, tq, D), lambda b, qt, h: (b, qt, 0)),
        scratch_shapes=[
            pltpu.VMEM((N, D), x.dtype),       # LayerNorm(x), cached per batch
            pltpu.VMEM((H, N, hd), x.dtype),   # K per head, cached per batch
            pltpu.VMEM((H, N, hd), x.dtype),   # V per head, cached per batch
            pltpu.VMEM((tq, D), jnp.float32),  # output-projection accumulator
        ],
        # qt/h stay "arbitrary": the scratch caches (xn, K, V) are filled at
        # qt==0 / h==0 and reused, so only the batch axis is megacore-safe.
        compiler_params=pltpu.CompilerParams(
            dimension_semantics=("parallel", "arbitrary", "arbitrary")),
    )(x, gamma, beta, wq, wk, wv, wo, bout)


def _reference(x, gamma, beta, wqkv, wout, bout, num_heads):
    """Plain-JAX reference mirroring the PyTorch forward (mask=None, eval)."""
    B, N, D = x.shape
    hd = D // num_heads
    xf = x.astype(jnp.float32)
    mean = jnp.mean(xf, axis=-1, keepdims=True)
    var = jnp.mean((xf - mean) ** 2, axis=-1, keepdims=True)
    xn = (xf - mean) / jnp.sqrt(var + 1e-5) * gamma + beta
    qkv = xn @ wqkv                                               # (B, N, 3D)
    q, k, v = jnp.split(qkv, 3, axis=-1)

    def heads(t):
        return t.reshape(B, N, num_heads, hd).transpose(0, 2, 1, 3)

    q, k, v = heads(q), heads(k), heads(v)                        # (B, H, N, hd)
    dots = jnp.einsum('bhqd,bhkd->bhqk', q, k) * hd ** (-0.5)
    attn = jax.nn.softmax(dots, axis=-1)
    out = jnp.einsum('bhqk,bhkd->bhqd', attn, v)
    out = out.transpose(0, 2, 1, 3).reshape(B, N, D)
    return out @ wout + bout


if __name__ == "__main__":
    B, N, D, H = 2, 8, 32, 8

    key = jax.random.PRNGKey(0)
    k_x, k_qkv, k_wo, k_bo, k_g, k_b = jax.random.split(key, 6)

    x = jax.random.normal(k_x, (B, N, D), dtype=jnp.float32)
    gamma = 1.0 + 0.1 * jax.random.normal(k_g, (1, D), dtype=jnp.float32)
    beta = 0.1 * jax.random.normal(k_b, (1, D), dtype=jnp.float32)
    wqkv = jax.random.normal(k_qkv, (D, 3 * D), dtype=jnp.float32) / math.sqrt(D)
    wout = jax.random.normal(k_wo, (D, D), dtype=jnp.float32) / math.sqrt(D)
    bout = 0.1 * jax.random.normal(k_bo, (1, D), dtype=jnp.float32)

    # f32 path (tight check; approx reciprocal bounds the tolerance).
    out = conformer_attention(x, gamma, beta, wqkv, wout, bout, num_heads=H)
    out = jax.block_until_ready(out)
    ref = _reference(x, gamma, beta, wqkv, wout, bout, H)
    assert out.shape == (B, N, D)
    err = float(jnp.max(jnp.abs(out - ref)))
    assert jnp.allclose(out, ref, atol=2e-3, rtol=2e-3), f"f32 max abs err {err}"

    # bf16 path: bf16 operands feed the MXU; stats/softmax/accumulation stay f32.
    out_bf16 = conformer_attention(
        x.astype(jnp.bfloat16), gamma.astype(jnp.bfloat16),
        beta.astype(jnp.bfloat16), wqkv.astype(jnp.bfloat16),
        wout.astype(jnp.bfloat16), bout.astype(jnp.bfloat16), num_heads=H)
    out_bf16 = jax.block_until_ready(out_bf16)
    assert out_bf16.shape == (B, N, D)
    out_bf16_f32 = out_bf16.astype(jnp.float32)
    assert bool(jnp.all(jnp.isfinite(out_bf16_f32)))
    assert jnp.allclose(out_bf16_f32, ref, atol=1e-1, rtol=1e-1), (
        f"bf16 max abs err {float(jnp.max(jnp.abs(out_bf16_f32 - ref)))}")

    print("KERNEL_OK")
</pallas_src>

<mosaic_0001>
module attributes {stable_mosaic.version = 11 : i64} {
  func.func @_mhsa_kernel(%arg0: i32, %arg1: i32, %arg2: i32, %arg3: memref<1x8x32xf32, #tpu.memory_space<vmem>>, %arg4: memref<1x32xf32, #tpu.memory_space<vmem>>, %arg5: memref<1x32xf32, #tpu.memory_space<vmem>>, %arg6: memref<1x32x4xf32, #tpu.memory_space<vmem>>, %arg7: memref<1x32x4xf32, #tpu.memory_space<vmem>>, %arg8: memref<1x32x4xf32, #tpu.memory_space<vmem>>, %arg9: memref<1x4x32xf32, #tpu.memory_space<vmem>>, %arg10: memref<1x32xf32, #tpu.memory_space<vmem>>, %arg11: memref<1x8x32xf32, #tpu.memory_space<vmem>>, %arg12: memref<8x32xf32, #tpu.memory_space<vmem>>, %arg13: memref<8x8x4xf32, #tpu.memory_space<vmem>>, %arg14: memref<8x8x4xf32, #tpu.memory_space<vmem>>, %arg15: memref<8x32xf32, #tpu.memory_space<vmem>>) attributes {dimension_semantics = [#tpu.dimension_semantics<parallel>, #tpu.dimension_semantics<arbitrary>, #tpu.dimension_semantics<arbitrary>], iteration_bounds = array<i64: 2, 1, 8>, scalar_prefetch = 0 : i64, scratch_operands = 4 : i64, tpu.core_type = #tpu.core_type<tc>, window_params = [{transform_indices = @transform_0, window_bounds = array<i64: 1, 8, 32>}, {pipeline_mode = #tpu.pipeline_mode<synchronous>, transform_indices = @transform_1, window_bounds = array<i64: 1, 32>}, {pipeline_mode = #tpu.pipeline_mode<synchronous>, transform_indices = @transform_2, window_bounds = array<i64: 1, 32>}, {transform_indices = @transform_3, window_bounds = array<i64: 1, 32, 4>}, {transform_indices = @transform_4, window_bounds = array<i64: 1, 32, 4>}, {transform_indices = @transform_5, window_bounds = array<i64: 1, 32, 4>}, {transform_indices = @transform_6, window_bounds = array<i64: 1, 4, 32>}, {pipeline_mode = #tpu.pipeline_mode<synchronous>, transform_indices = @transform_7, window_bounds = array<i64: 1, 32>}, {transform_indices = @transform_8, window_bounds = array<i64: 1, 8, 32>}]} {
    %c0_i32 = arith.constant 0 : i32
    %0 = arith.cmpi eq, %arg1, %c0_i32 : i32
    %c0_i32_0 = arith.constant 0 : i32
    %1 = arith.cmpi eq, %arg2, %c0_i32_0 : i32
    %2 = arith.andi %0, %1 : i1
    %3 = arith.extui %2 : i1 to i32
    %c0_i32_1 = arith.constant 0 : i32
    %4 = arith.cmpi ne, %3, %c0_i32_1 : i32
    scf.if %4 {
      %c0_27 = arith.constant 0 : index
      %c0_28 = arith.constant 0 : index
      %c0_29 = arith.constant 0 : index
      %47 = vector.load %arg3[%c0_27, %c0_28, %c0_29] : memref<1x8x32xf32, #tpu.memory_space<vmem>>, vector<1x8x32xf32>
      %48 = vector.shape_cast %47 : vector<1x8x32xf32> to vector<8x32xf32>
      %cst_30 = arith.constant dense<0.000000e+00> : vector<8xf32>
      %49 = vector.multi_reduction <add>, %48, %cst_30 [1] : vector<8x32xf32> to vector<8xf32>
      %50 = vector.shape_cast %49 : vector<8xf32> to vector<8x1xf32>
      %cst_31 = arith.constant 3.200000e+01 : f32
      %51 = vector.broadcast %cst_31 : f32 to vector<8x1xf32>
      %52 = arith.divf %50, %51 : vector<8x1xf32>
      %53 = vector.broadcast %52 : vector<8x1xf32> to vector<8x32xf32>
      %54 = arith.subf %48, %53 : vector<8x32xf32>
      %55 = arith.mulf %54, %54 : vector<8x32xf32>
      %cst_32 = arith.constant dense<0.000000e+00> : vector<8xf32>
      %56 = vector.multi_reduction <add>, %55, %cst_32 [1] : vector<8x32xf32> to vector<8xf32>
      %57 = vector.shape_cast %56 : vector<8xf32> to vector<8x1xf32>
      %cst_33 = arith.constant 3.200000e+01 : f32
      %58 = vector.broadcast %cst_33 : f32 to vector<8x1xf32>
      %59 = arith.divf %57, %58 : vector<8x1xf32>
      %60 = vector.broadcast %52 : vector<8x1xf32> to vector<8x32xf32>
      %61 = arith.subf %48, %60 : vector<8x32xf32>
      %cst_34 = arith.constant 9.99999974E-6 : f32
      %62 = vector.broadcast %cst_34 : f32 to vector<8x1xf32>
      %63 = arith.addf %59, %62 : vector<8x1xf32>
      %64 = math.rsqrt %63 : vector<8x1xf32>
      %65 = vector.broadcast %64 : vector<8x1xf32> to vector<8x32xf32>
      %66 = arith.mulf %61, %65 : vector<8x32xf32>
      %c0_35 = arith.constant 0 : index
      %c0_36 = arith.constant 0 : index
      %67 = vector.load %arg4[%c0_35, %c0_36] : memref<1x32xf32, #tpu.memory_space<vmem>>, vector<1x32xf32>
      %68 = vector.broadcast %67 : vector<1x32xf32> to vector<8x32xf32>
      %69 = arith.mulf %66, %68 : vector<8x32xf32>
      %c0_37 = arith.constant 0 : index
      %c0_38 = arith.constant 0 : index
      %70 = vector.load %arg5[%c0_37, %c0_38] : memref<1x32xf32, #tpu.memory_space<vmem>>, vector<1x32xf32>
      %71 = vector.broadcast %70 : vector<1x32xf32> to vector<8x32xf32>
      %72 = arith.addf %69, %71 : vector<8x32xf32>
      %c0_39 = arith.constant 0 : index
      %c0_40 = arith.constant 0 : index
      %73 = vector.load %arg12[%c0_39, %c0_40] : memref<8x32xf32, #tpu.memory_space<vmem>>, vector<8x32xf32>
      tpu.vector_store %arg12[%c0_39, %c0_40], %72 {strides = array<i32>} : memref<8x32xf32, #tpu.memory_space<vmem>>, vector<8x32xf32>,
    } else {
    }
    %c0_i32_2 = arith.constant 0 : i32
    %5 = arith.cmpi eq, %arg1, %c0_i32_2 : i32
    %6 = arith.extui %5 : i1 to i32
    %c0_i32_3 = arith.constant 0 : i32
    %7 = arith.cmpi ne, %6, %c0_i32_3 : i32
    scf.if %7 {
      %c0_27 = arith.constant 0 : index
      %c0_28 = arith.constant 0 : index
      %47 = vector.load %arg12[%c0_27, %c0_28] : memref<8x32xf32, #tpu.memory_space<vmem>>, vector<8x32xf32>
      %c0_29 = arith.constant 0 : index
      %c0_30 = arith.constant 0 : index
      %c0_31 = arith.constant 0 : index
      %48 = vector.load %arg7[%c0_29, %c0_30, %c0_31] : memref<1x32x4xf32, #tpu.memory_space<vmem>>, vector<1x32x4xf32>
      %49 = vector.shape_cast %48 : vector<1x32x4xf32> to vector<32x4xf32>
      %cst_32 = arith.constant dense<0.000000e+00> : vector<8x4xf32>
      %50 = tpu.matmul %47, %49, %cst_32 {dimension_numbers = #tpu.dot_dimension_numbers<[1], [0], [0], [1], [0, 0, 1, 1], [], []>} : vector<8x32xf32>, vector<32x4xf32>, vector<8x4xf32> -> vector<8x4xf32>
      %51 = arith.index_cast %arg2 : i32 to index
      %c0_33 = arith.constant 0 : index
      %c0_34 = arith.constant 0 : index
      %52 = vector.load %arg13[%51, %c0_33, %c0_34] : memref<8x8x4xf32, #tpu.memory_space<vmem>>, vector<1x8x4xf32>
      %53 = vector.shape_cast %52 : vector<1x8x4xf32> to vector<8x4xf32>
      %54 = vector.shape_cast %50 : vector<8x4xf32> to vector<1x8x4xf32>
      tpu.vector_store %arg13[%51, %c0_33, %c0_34], %54 {strides = array<i32>} : memref<8x8x4xf32, #tpu.memory_space<vmem>>, vector<1x8x4xf32>,
      %c0_35 = arith.constant 0 : index
      %c0_36 = arith.constant 0 : index
      %c0_37 = arith.constant 0 : index
      %55 = vector.load %arg8[%c0_35, %c0_36, %c0_37] : memref<1x32x4xf32, #tpu.memory_space<vmem>>, vector<1x32x4xf32>
      %56 = vector.shape_cast %55 : vector<1x32x4xf32> to vector<32x4xf32>
      %cst_38 = arith.constant dense<0.000000e+00> : vector<8x4xf32>
      %57 = tpu.matmul %47, %56, %cst_38 {dimension_numbers = #tpu.dot_dimension_numbers<[1], [0], [0], [1], [0, 0, 1, 1], [], []>} : vector<8x32xf32>, vector<32x4xf32>, vector<8x4xf32> -> vector<8x4xf32>
      %58 = arith.index_cast %arg2 : i32 to index
      %c0_39 = arith.constant 0 : index
      %c0_40 = arith.constant 0 : index
      %59 = vector.load %arg14[%58, %c0_39, %c0_40] : memref<8x8x4xf32, #tpu.memory_space<vmem>>, vector<1x8x4xf32>
      %60 = vector.shape_cast %59 : vector<1x8x4xf32> to vector<8x4xf32>
      %61 = vector.shape_cast %57 : vector<8x4xf32> to vector<1x8x4xf32>
      tpu.vector_store %arg14[%58, %c0_39, %c0_40], %61 {strides = array<i32>} : memref<8x8x4xf32, #tpu.memory_space<vmem>>, vector<1x8x4xf32>,
    } else {
    }
    %c0_i32_4 = arith.constant 0 : i32
    %8 = arith.cmpi eq, %arg2, %c0_i32_4 : i32
    %9 = arith.extui %8 : i1 to i32
    %c0_i32_5 = arith.constant 0 : i32
    %10 = arith.cmpi ne, %9, %c0_i32_5 : i32
    scf.if %10 {
      %cst_27 = arith.constant 0.000000e+00 : f32
      %47 = vector.broadcast %cst_27 : f32 to vector<8x32xf32>
      %c0_28 = arith.constant 0 : index
      %c0_29 = arith.constant 0 : index
      %48 = vector.load %arg15[%c0_28, %c0_29] : memref<8x32xf32, #tpu.memory_space<vmem>>, vector<8x32xf32>
      tpu.vector_store %arg15[%c0_28, %c0_29], %47 {strides = array<i32>} : memref<8x32xf32, #tpu.memory_space<vmem>>, vector<8x32xf32>,
    } else {
    }
    %c8_i32 = arith.constant 8 : i32
    %11 = arith.muli %arg1, %c8_i32 : i32
    %12 = tpu.assume_multiple %11, 8 : i32
    %13 = arith.index_cast %12 : i32 to index
    %c0 = arith.constant 0 : index
    %14 = vector.load %arg12[%13, %c0] : memref<8x32xf32, #tpu.memory_space<vmem>>, vector<8x32xf32>
    %c0_6 = arith.constant 0 : index
    %c0_7 = arith.constant 0 : index
    %c0_8 = arith.constant 0 : index
    %15 = vector.load %arg6[%c0_6, %c0_7, %c0_8] : memref<1x32x4xf32, #tpu.memory_space<vmem>>, vector<1x32x4xf32>
    %16 = vector.shape_cast %15 : vector<1x32x4xf32> to vector<32x4xf32>
    %cst = arith.constant dense<0.000000e+00> : vector<8x4xf32>
    %17 = tpu.matmul %14, %16, %cst {dimension_numbers = #tpu.dot_dimension_numbers<[1], [0], [0], [1], [0, 0, 1, 1], [], []>} : vector<8x32xf32>, vector<32x4xf32>, vector<8x4xf32> -> vector<8x4xf32>
    %cst_9 = arith.constant 5.000000e-01 : f32
    %18 = vector.broadcast %cst_9 : f32 to vector<8x4xf32>
    %19 = arith.mulf %17, %18 : vector<8x4xf32>
    %20 = arith.index_cast %arg2 : i32 to index
    %c0_10 = arith.constant 0 : index
    %c0_11 = arith.constant 0 : index
    %21 = vector.load %arg13[%20, %c0_10, %c0_11] : memref<8x8x4xf32, #tpu.memory_space<vmem>>, vector<1x8x4xf32>
    %22 = vector.shape_cast %21 : vector<1x8x4xf32> to vector<8x4xf32>
    %23 = arith.index_cast %arg2 : i32 to index
    %c0_12 = arith.constant 0 : index
    %c0_13 = arith.constant 0 : index
    %24 = vector.load %arg14[%23, %c0_12, %c0_13] : memref<8x8x4xf32, #tpu.memory_space<vmem>>, vector<1x8x4xf32>
    %25 = vector.shape_cast %24 : vector<1x8x4xf32> to vector<8x4xf32>
    %cst_14 = arith.constant dense<0.000000e+00> : vector<8x8xf32>
    %26 = tpu.matmul %19, %22, %cst_14 {dimension_numbers = #tpu.dot_dimension_numbers<[1], [1], [0], [0], [0, 0, 1, 0], [], []>} : vector<8x4xf32>, vector<8x4xf32>, vector<8x8xf32> -> vector<8x8xf32>
    %cst_15 = arith.constant dense<0xFF800000> : vector<8xf32>
    %27 = vector.multi_reduction <maximumf>, %26, %cst_15 [1] : vector<8x8xf32> to vector<8xf32>
    %28 = vector.shape_cast %27 : vector<8xf32> to vector<8x1xf32>
    %29 = vector.broadcast %28 : vector<8x1xf32> to vector<8x8xf32>
    %30 = arith.subf %26, %29 : vector<8x8xf32>
    %31 = math.exp %30 : vector<8x8xf32>
    %cst_16 = arith.constant dense<0.000000e+00> : vector<8xf32>
    %32 = vector.multi_reduction <add>, %31, %cst_16 [1] : vector<8x8xf32> to vector<8xf32>
    %33 = vector.shape_cast %32 : vector<8xf32> to vector<8x1xf32>
    %34 = tpu.reciprocal %33 {approx = true} : vector<8x1xf32> -> vector<8x1xf32>
    %35 = vector.broadcast %34 : vector<8x1xf32> to vector<8x8xf32>
    %36 = arith.mulf %31, %35 : vector<8x8xf32>
    %cst_17 = arith.constant dense<0.000000e+00> : vector<8x4xf32>
    %37 = tpu.matmul %36, %25, %cst_17 {dimension_numbers = #tpu.dot_dimension_numbers<[1], [0], [0], [1], [0, 0, 1, 1], [], []>} : vector<8x8xf32>, vector<8x4xf32>, vector<8x4xf32> -> vector<8x4xf32>
    %c0_18 = arith.constant 0 : index
    %c0_19 = arith.constant 0 : index
    %38 = vector.load %arg15[%c0_18, %c0_19] : memref<8x32xf32, #tpu.memory_space<vmem>>, vector<8x32xf32>
    %c0_20 = arith.constant 0 : index
    %c0_21 = arith.constant 0 : index
    %c0_22 = arith.constant 0 : index
    %39 = vector.load %arg9[%c0_20, %c0_21, %c0_22] : memref<1x4x32xf32, #tpu.memory_space<vmem>>, vector<1x4x32xf32>
    %40 = vector.shape_cast %39 : vector<1x4x32xf32> to vector<4x32xf32>
    %cst_23 = arith.constant dense<0.000000e+00> : vector<8x32xf32>
    %41 = tpu.matmul %37, %40, %cst_23 {dimension_numbers = #tpu.dot_dimension_numbers<[1], [0], [0], [1], [0, 0, 1, 1], [], []>} : vector<8x4xf32>, vector<4x32xf32>, vector<8x32xf32> -> vector<8x32xf32>
    %42 = arith.addf %38, %41 : vector<8x32xf32>
    %c0_24 = arith.constant 0 : index
    %c0_25 = arith.constant 0 : index
    %43 = vector.load %arg15[%c0_24, %c0_25] : memref<8x32xf32, #tpu.memory_space<vmem>>, vector<8x32xf32>
    tpu.vector_store %arg15[%c0_24, %c0_25], %42 {strides = array<i32>} : memref<8x32xf32, #tpu.memory_space<vmem>>, vector<8x32xf32>,
    %c7_i32 = arith.constant 7 : i32
    %44 = arith.cmpi eq, %arg2, %c7_i32 : i32
    %45 = arith.extui %44 : i1 to i32
    %c0_i32_26 = arith.constant 0 : i32
    %46 = arith.cmpi ne, %45, %c0_i32_26 : i32
    scf.if %46 {
      %c0_27 = arith.constant 0 : index
      %c0_28 = arith.constant 0 : index
      %47 = vector.load %arg15[%c0_27, %c0_28] : memref<8x32xf32, #tpu.memory_space<vmem>>, vector<8x32xf32>
      %c0_29 = arith.constant 0 : index
      %c0_30 = arith.constant 0 : index
      %48 = vector.load %arg10[%c0_29, %c0_30] : memref<1x32xf32, #tpu.memory_space<vmem>>, vector<1x32xf32>
      %49 = vector.broadcast %48 : vector<1x32xf32> to vector<8x32xf32>
      %50 = arith.addf %47, %49 : vector<8x32xf32>
      %c0_31 = arith.constant 0 : index
      %c0_32 = arith.constant 0 : index
      %c0_33 = arith.constant 0 : index
      %51 = vector.load %arg11[%c0_31, %c0_32, %c0_33] : memref<1x8x32xf32, #tpu.memory_space<vmem>>, vector<1x8x32xf32>
      %52 = vector.shape_cast %51 : vector<1x8x32xf32> to vector<8x32xf32>
      %53 = vector.shape_cast %50 : vector<8x32xf32> to vector<1x8x32xf32>
      tpu.vector_store %arg11[%c0_31, %c0_32, %c0_33], %53 {strides = array<i32>} : memref<1x8x32xf32, #tpu.memory_space<vmem>>, vector<1x8x32xf32>,
    } else {
    }
    return
  }
  func.func @transform_0(%arg0: i32, %arg1: i32, %arg2: i32) -> (i32, i32, i32) {
    %c0_i32 = arith.constant 0 : i32
    %c0_i32_0 = arith.constant 0 : i32
    %c0_i32_1 = arith.constant 0 : i32
    return %arg0, %c0_i32, %c0_i32_0 : i32, i32, i32
  }
  func.func @transform_1(%arg0: i32, %arg1: i32, %arg2: i32) -> (i32, i32) {
    %c0_i32 = arith.constant 0 : i32
    %c0_i32_0 = arith.constant 0 : i32
    %c0_i32_1 = arith.constant 0 : i32
    return %c0_i32, %c0_i32_0 : i32, i32
  }
  func.func @transform_2(%arg0: i32, %arg1: i32, %arg2: i32) -> (i32, i32) {
    %c0_i32 = arith.constant 0 : i32
    %c0_i32_0 = arith.constant 0 : i32
    %c0_i32_1 = arith.constant 0 : i32
    return %c0_i32, %c0_i32_0 : i32, i32
  }
  func.func @transform_3(%arg0: i32, %arg1: i32, %arg2: i32) -> (i32, i32, i32) {
    %c0_i32 = arith.constant 0 : i32
    %c0_i32_0 = arith.constant 0 : i32
    %c0_i32_1 = arith.constant 0 : i32
    return %arg2, %c0_i32, %c0_i32_0 : i32, i32, i32
  }
  func.func @transform_4(%arg0: i32, %arg1: i32, %arg2: i32) -> (i32, i32, i32) {
    %c0_i32 = arith.constant 0 : i32
    %c0_i32_0 = arith.constant 0 : i32
    %c0_i32_1 = arith.constant 0 : i32
    return %arg2, %c0_i32, %c0_i32_0 : i32, i32, i32
  }
  func.func @transform_5(%arg0: i32, %arg1: i32, %arg2: i32) -> (i32, i32, i32) {
    %c0_i32 = arith.constant 0 : i32
    %c0_i32_0 = arith.constant 0 : i32
    %c0_i32_1 = arith.constant 0 : i32
    return %arg2, %c0_i32, %c0_i32_0 : i32, i32, i32
  }
  func.func @transform_6(%arg0: i32, %arg1: i32, %arg2: i32) -> (i32, i32, i32) {
    %c0_i32 = arith.constant 0 : i32
    %c0_i32_0 = arith.constant 0 : i32
    %c0_i32_1 = arith.constant 0 : i32
    return %arg2, %c0_i32, %c0_i32_0 : i32, i32, i32
  }
  func.func @transform_7(%arg0: i32, %arg1: i32, %arg2: i32) -> (i32, i32) {
    %c0_i32 = arith.constant 0 : i32
    %c0_i32_0 = arith.constant 0 : i32
    %c0_i32_1 = arith.constant 0 : i32
    return %c0_i32, %c0_i32_0 : i32, i32
  }
  func.func @transform_8(%arg0: i32, %arg1: i32, %arg2: i32) -> (i32, i32, i32) {
    %c0_i32 = arith.constant 0 : i32
    %c0_i32_0 = arith.constant 0 : i32
    return %arg0, %arg1, %c0_i32 : i32, i32, i32
  }
}

</mosaic_0001>

<bundles_post_ra>
// kernel: tpu_custom_call.1
= control target key start
LH: loop header
LB: loop body
LE: loop exit
PB: predicated region body
PF: predicated region fallthrough
CT: control target
= control target key end

     0   :  { %13 = vsyncpa [#allocation7], 0  ;;  %s1660_s0 = inlined_call_operand.vmem [shape: f32[2,8,32], index: 0, kind: input, shape index: {}]   ;;  %s1661_s1 = inlined_call_operand.vmem [shape: f32[1,32], index: 1, kind: input, shape index: {}]   ;;  %s1662_s2 = inlined_call_operand.vmem [shape: f32[1,32], index: 2, kind: input, shape index: {}]   ;;  %s1663_s3 = inlined_call_operand.vmem [shape: f32[8,32,4], index: 3, kind: input, shape index: {}]   ;;  %s1664_s4 = inlined_call_operand.vmem [shape: f32[8,32,4], index: 4, kind: input, shape index: {}]   ;;  %s1665_s5 = inlined_call_operand.vmem [shape: f32[8,32,4], index: 5, kind: input, shape index: {}]   ;;  %s1666_s6 = inlined_call_operand.vmem [shape: f32[8,4,32], index: 6, kind: input, shape index: {}]   ;;  %s1667_s7 = inlined_call_operand.vmem [shape: f32[1,32], index: 7, kind: input, shape index: {}]   ;;  %s1668_s8 = inlined_call_operand.hbm [shape: f32[2,8,32], index: 8, kind: output, shape index: {}]  }
   0x1   :  { %15 = vsyncpa [#allocation7 + $0x1], 0  ;;  %s1448_s27 = smov 0   ;;  %s1450_s28 = smov 0  }
   0x2   :  { %s1452_s29 = smov 0   ;;  %s1454_s30 = smov 0  }
   0x3   :  { %s1456_s9 = smov 0   ;;  %s1458_s10 = smov 0  }
   0x4   :  { %s1460_s11 = smov 0   ;;  %s1462_s12 = smov 0  }
   0x5 LB: > { %1678 = sst [smem:[#allocation9_spill]] %s1368_s27  ;;  %s1096_s13 = sadd.s32 4294967295, %s1396_s12   ;;  %s1396_s12 = sphi %s1462_s12, %s21_s12   ;;  %s1392_s11 = sphi %s1460_s11, %s1698_s11   ;;  %s1388_s10 = sphi %s1458_s10, %s1697_s10   ;;  %s1384_s9 = sphi %s1456_s9, %s1696_s9   ;;  %s1380_s30 = sphi %s1454_s30, %s1695_s30   ;;  %s1376_s29 = sphi %s1452_s29, %s1694_s29   ;;  %s1372_s28 = sphi %s1450_s28, %s1700_s28   ;;  %s1368_s27 = sphi %s1448_s27, %s1699_s27  }
   0x6   : > { %1679 = sst [smem:[#allocation10_spill]] %s1376_s29  ;;  %s1097_s14 = sadd.s32 4294967294, %s1396_s12  }
   0x7   : > { %1680 = sst [smem:[#allocation11_spill]] %s1388_s10  ;;  %s33_s15 = sadd.s32 1, %s1388_s10 }
   0x8   : > { %1681 = sst [smem:[#allocation12_spill]] %s1392_s11  ;;  %p34_p0 = scmp.ge.s32.totalorder %s33_s15, 8 }
   0x9   : > { %1682 = sst [smem:[#allocation13_spill]] %s1396_s12  ;;  %s40_s16 = sadd.s32 1, %s1392_s11 }
   0xa   : > { %p252_p1 = scmp.ne.s32.totalorder %s1376_s29, %s1372_s28  ;;  %p253_p2 = scmp.eq.s32.totalorder %s1096_s13, 15 }
   0xb   : > { %s1702_s15 = smov (%p34_p0, %s33_s15), 0  ;;  %s1704_s16 = smov (!%p34_p0, %s40_s16), %s1392_s11 }
   0xc   : > { %1683 = sst [smem:[#allocation14_spill]] %s1702_s15  ;;  %p1497_p3 = por %p253_p2, %p252_p1 }
   0xd   : > { %p258_p4 = scmp.ne.s32.totalorder %s1372_s28, %s1368_s27  ;;  %p42_p5 = scmp.ge.s32.totalorder %s1704_s16, 2 }
   0xe   : > { %p259_p6 = scmp.eq.s32.totalorder %s1097_s14, 15  ;;  %p1100_p7 = scmp.ge.s32.totalorder %s1396_s12, 1 }
   0xf   : > { %p324_p8 = scmp.lt.s32.totalorder %s1396_s12, 17  ;;  %s1706_s16 = smov (%p42_p5, %s1704_s16), 0 }
  0x10   : > { %1685 = sst [smem:[#allocation15_spill]] %s1706_s16  ;;  %p1507_p9 = por %p259_p6, %p258_p4 }
  0x11   : > { %p325_p10 = pnand %p1100_p7, %p324_p8  ;;  %s237_s19 = ssub.s32 %s1392_s11, %s1706_s16 }
  0x12   : > { %s1686_s18 = scalar_select %p1507_p9, 1, 0 }
  0x13   : > { %s242_s20 = sadd.s32 1, %s1376_s29  ;;  %p240_p11 = scmp.eq.s32.totalorder %s237_s19, 0 }
  0x14   : > { %1687 = sst [smem:[#allocation16_spill]] %s1686_s18  ;;  %328 = sbr.rel (%p325_p10) target bundleno = 1782 (0x6f6), region = 52 }
  0x15   : > { %s1515_s21 = scalar_select %p240_p11, %s1376_s29, %s242_s20  }
  0x16   : > { %s1672_s22 = sand.u32 (!%p325_p10), 1, %s1372_s28   ;;  %p376_p12 = scmp.lt.s32.totalorder (!%p325_p10), %s1384_s9, 1 }
  0x17   : > { %1688 = sst [smem:[#allocation17_spill]] %s1515_s21  ;;  %s1521_s23 = sshll.u32 (!%p325_p10), %s1672_s22, 3 }
  0x18   : > { %p380_p13 = scmp.lt.s32.totalorder (!%p325_p10), %s1380_s30, 7  ;;  %p400_p0 = scmp.eq.s32.totalorder (!%p325_p10), %s1380_s30, 0 }
  0x19   : > { %s375_s14 = scalar_lea.vmem (!%p325_p10), [#allocation6], %s1521_s23 }
  0x1b   : > { %s377_s24 = scalar_select %p376_p12, %s1384_s9, 1 }
  0x1c   : > { %s381_s25 = scalar_select %p380_p13, %s1380_s30, 7 }
  0x1d   : > { %s1102_s26 = sshll.u32 %s377_s24, 3  ;;  %404 = sbr.rel (!%p400_p0) target bundleno = 346 (0x15a), region = 56  ;;  %vm406_vm0 = vcmask (%p400_p0), 261120   ;;  %v1111_v11 = vld [vmem:[%s1661_s1] ss:$0 sm:$0xff] (%p400_p0) }
  0x1e   : > { %s379_s19 = scalar_lea.vmem %s1660_s0, %s1102_s26  ;;  %s1130_s20 = sshll.u32 %s381_s25, 5  ;;  %v1112_v13 = vld [vmem:[%s1662_s2] ss:$0 sm:$0xff] (%p400_p0) }
  0x1f   : > { %s1533_s11 = scalar_lea.vmem %s1663_s3, %s1130_s20  ;;  %s1538_s22 = scalar_lea.vmem %s1664_s4, %s1130_s20  ;;  %v405_v0 = vld [vmem:[%s379_s19] sm:$0xff] (%p400_p0) }
  0x20   : > { %s1543_s27 = scalar_lea.vmem %s1665_s5, %s1130_s20  ;;  %s1109_s24 = sshll.u32 %s381_s25, 2  ;;  %v407_v1 = vsel (%p400_p0), %vm406_vm0, %v405_v0, 0.0 }
  0x21   : > { %s1548_s26 = scalar_lea.vmem %s1666_s6, %s1109_s24  ;;  %408 = vadd.xlane.f32.xlu0 (%p400_p0), %v407_v1 }
  0xae   : > { %v409_v2 = vpop.xlane.xlu0 %408 }
  0xaf   : > { %v411_v3 = vmul.f32 0.03125, %v409_v2 }
  0xb1   : > { %v412_v4 = vsub.f32 %v405_v0, %v411_v3 }
  0xb3   : > { %v413_v5 = vmul.f32 %v412_v4, %v412_v4 }
  0xb5   : > { %v414_v6 = vsel %vm406_vm0, %v413_v5, 0.0 }
  0xb6   : > { %415 = vadd.xlane.f32.xlu0 %v414_v6 }
 0x143   : > { %v416_v7 = vpop.xlane.xlu0 %415 }
 0x144   : > { %v417_v8 = vmul.f32 0.03125, %v416_v7 }
 0x146   : > { %v418_v9 = vadd.f32 1e-05, %v417_v8 }
 0x148   : > { %1296 = vrsqrt.f32 %v418_v9 }
 0x152   : > { %v1297_v10 = vpop.eup %1296 }
 0x153   : > { %v420_v12 = vmul.f32 %v1297_v10, %v412_v4 }
 0x155   : > { %v428_v14 = vmul.f32 %v1111_v11, %v420_v12 }
 0x157   : > { %v436_v15 = vadd.f32 %v1112_v13, %v428_v14 }
 0x159   : > { %437 = vst.msk [vmem:[#allocation2] sm:$0xff] %vm406_vm0, %v436_v15 }
 0x15a PF: > { %v442_v16 = vld [vmem:[%s1538_s22] sm:$0xff]  ;;  %v443_v17 = vld [vmem:[%s1538_s22 + $0x8] sm:$0xff]  ;;  %v1398_v19 = vmov 0.0|0.0   ;;  %v444_v22 = vld [vmem:[%s1538_s22 + $0x10] sm:$0xff]  ;;  %vm1399_vm1 = vmmov 0   ;;  %v1400_v27 = vmov 0.0  }
 0x15b   : > { %v524_v18 = vld [vmem:[%s1543_s27] sm:$0xff]  ;;  %1203 = vmatprep.subr.bf16.mxu0 %v1398_v19  ;;  %1209 = vmatprep.subr.bf16.mxu1 %v1398_v19  ;;  %v1204_v20 = vpack.c.bf16 %v443_v17, %v442_v16  ;;  %v525_v21 = vld [vmem:[%s1543_s27 + $0x8] sm:$0xff]  ;;  %v445_v23 = vld [vmem:[%s1538_s22 + $0x18] sm:$0xff]  ;;  %vm446_vm2 = vcmask 261120   ;;  %vm522_vm3 = vcmask 31744   ;;  %p1116_p1 = scmp.ne.s32.totalorder %s1380_s30, 0 }
 0x15c   : > { %v1210_v24 = vpack.c.bf16 %v525_v21, %v524_v18  ;;  %v526_v25 = vld [vmem:[%s1543_s27 + $0x10] sm:$0xff]  ;;  %v527_v26 = vld [vmem:[%s1543_s27 + $0x18] sm:$0xff]  ;;  %1163 = vmatprep.mubr.msk.f32.mxu0 %vm1399_vm1, %v1400_v27  ;;  %1174 = vmatprep.mubr.msk.f32.mxu1 %vm1399_vm1, %v1400_v27  ;;  %v1207_v28 = vpack.c.bf16 %v445_v23, %v444_v22  ;;  %s1114_s27 = sshll.u32 %s1380_s30, 3  ;;  %v1401_v35 = vmov (!%p1116_p1), 0.0  }
 0x15d   : > { %1205 = vmatpush3.bf16.msra.mxu0 %v1204_v20  ;;  %v1213_v29 = vpack.c.bf16 %v527_v26, %v526_v25  ;;  %s521_s16 = scalar_lea.vmem [#allocation3], %s1114_s27  ;;  %s1574_s18 = scalar_lea.vmem [#allocation4], %s1114_s27  ;;  %604 = vst.msk [vmem:[#allocation5] sm:$0xff] (!%p1116_p1), %vm446_vm2, %v1401_v35 }
 0x15e   : > { %1211 = vmatpush3.bf16.msra.mxu1 %v1210_v24  ;;  %1206 = vmatprep.subr.bf16.mxu0 %v1398_v19 }
 0x15f   : > { %1212 = vmatprep.subr.bf16.mxu1 %v1398_v19 }
 0x160   : > { %v441_v30 = vld [vmem:[#allocation2] sm:$0xff] }
 0x161   : > { %1208 = vmatpush3.bf16.msra.mxu0 %v1207_v28 }
 0x162   : > { %1214 = vmatpush3.bf16.msra.mxu1 %v1213_v29 }
 0x164   : > { %1164 = vmatmul.mubr.msk.f32.vlgmr.msra.gmra.mrb[0].mxu0 %vm446_vm2, %v441_v30 }
 0x165   : > { %1175 = vmatmul.mubr.msk.f32.vlgmr.msra.gmra.mrb[0].mxu1 %vm446_vm2, %v441_v30 }
 0x233   : > { %602 = sbr.rel (%p1116_p1) target bundleno = 570 (0x23a), region = 64 }
 0x237   : > { %v516_v31 = vpop.f32.mrb[0].mxu0 }
 0x238   : > { %523 = vst.msk [vmem:[%s521_s16] sm:$0xff] %vm522_vm3, %v516_v31  ;;  %v594_v32 = vpop.f32.mrb[0].mxu1  ;;  %v1165_v33 = vpop.f32.mrb[1].mxu0 }
 0x239   : > { %599 = vst.msk [vmem:[%s1574_s18] sm:$0xff] %vm522_vm3, %v594_v32  ;;  %v1176_v34 = vpop.f32.mrb[1].mxu1 }
 0x23a PF: > { %1215 = vmatprep.subr.bf16.mxu0 %v1398_v19  ;;  %v608_v36 = vld [vmem:[%s1533_s11] sm:$0xff]  ;;  %v609_v37 = vld [vmem:[%s1533_s11 + $0x8] sm:$0xff]  ;;  %v610_v38 = vld [vmem:[%s1533_s11 + $0x10] sm:$0xff]  ;;  %1185 = vmatprep.mubr.msk.f32.mxu0 %vm1399_vm1, %v1400_v27  ;;  %vm769_vm4 = vcmask 64512   ;;  %vm859_vm5 = vcmask 1043456   ;;  %p1124_p2 = scmp.ne.s32.totalorder %s1380_s30, 7 }
 0x23b   : > { %v1216_v39 = vpack.c.bf16 %v609_v37, %v608_v36  ;;  %v611_v40 = vld [vmem:[%s1533_s11 + $0x18] sm:$0xff]  ;;  %1188 = vmatprep.subr.mxu1 %v1400_v27  ;;  %1190 = vmatprep.mubr.msk.f32.mxu1 %vm1399_vm1, %v1400_v27  ;;  %v607_v42 = vld [vmem:[#allocation2] sm:$0xff]  ;;  %v854_v62 = vld [vmem:[#allocation5] sm:$0xff] }
 0x23c   : > { %v1219_v41 = vpack.c.bf16 %v611_v40, %v610_v38  ;;  %v855_v56 = vld [vmem:[%s1548_s26] sm:$0xf] }
 0x23d   : > { %1217 = vmatpush3.bf16.msra.mxu0 %v1216_v39  ;;  %v1125_v3 = vld [vmem:[%s1667_s7] ss:$0 sm:$0xff] (!%p1124_p2) }
 0x23e   : > { %1218 = vmatprep.subr.bf16.mxu0 %v1398_v19 }
 0x23f   : > { %v689_v43 = vld [vmem:[%s521_s16] sm:$0xff] }
 0x240   : > { %1189 = vmatpush3.xpose.msk.msra.mxu1 %vm522_vm3, %v689_v43  ;;  %v691_v55 = vld [vmem:[%s1574_s18] sm:$0xff] }
 0x241   : > { %1220 = vmatpush3.bf16.msra.mxu0 %v1219_v41  ;;  %1193 = vmatprep.subr.mxu1 %v1400_v27 }
 0x242   : > { %1198 = vmatprep.subr.mxu0 %v1400_v27 }
 0x244   : > { %1186 = vmatmul.mubr.msk.f32.vlgmr.msra.gmra.mrb[2].mxu0 %vm446_vm2, %v607_v42 }
 0x245   : > { %1200 = vmatprep.mubr.msk.f32.mxu0 %vm1399_vm1, %v1400_v27  ;;  %1199 = vmatpush3.msk.msra.mxu0 %vm859_vm5, %v855_v56 }
 0x317   : > { %v682_v44 = vpop.f32.mrb[2].mxu0 }
 0x318   : > { %v686_v45 = vmul.f32 0.5, %v682_v44  ;;  %v1187_v46 = vpop.f32.mrb[3].mxu0 }
 0x31a   : > { %1191 = vmatmul.mubr.msk.f32.vlgmr.msra.gmra.mrb[2].mxu1 %vm522_vm3, %v686_v45 }
 0x31b   : > { %1195 = vmatprep.mubr.msk.f32.mxu1 %vm1399_vm1, %v1400_v27  ;;  %1194 = vmatpush3.msra.mxu1 %v691_v55 }
 0x3ed   : > { %v765_v47 = vpop.f32.mrb[2].mxu1 }
 0x3ee   : > { %v1192_v48 = vpop.f32.mrb[3].mxu1  ;;  %v770_v49 = vsel %vm769_vm4, %v765_v47, -inf }
 0x3ef   : > { %771 = vmax.xlane.f32.xlu0 %v770_v49 }
 0x47c   : > { %v772_v50 = vpop.xlane.xlu0 %771 }
 0x47d   : > { %v773_v51 = vsub.f32 %v765_v47, %v772_v50 }
 0x47f   : > { %v774_v52 = vmul.f32 1.442695, %v773_v51 }
 0x481   : > { %1298 = vpow2.f32 %v774_v52 }
 0x48b   : > { %v1299_v53 = vpop.eup %1298 }
 0x48c   : > { %v776_v54 = vsel %vm769_vm4, %v1299_v53, 0.0 }
 0x48d   : > { %777 = vadd.xlane.f32.xlu0 %v776_v54 }
 0x51a   : > { %v778_v57 = vpop.xlane.xlu0 %777 }
 0x51b   : > { %1300 = vrcp.f32 %v778_v57 }
 0x525   : > { %v1301_v58 = vpop.eup %1300 }
 0x526   : > { %v780_v59 = vmul.f32 %v1301_v58, %v1299_v53 }
 0x528   : > { %1196 = vmatmul.mubr.msk.f32.vlgmr.msra.gmra.mrb[4].mxu1 %vm769_vm4, %v780_v59 }
 0x5fb   : > { %v850_v60 = vpop.f32.mrb[4].mxu1 }
 0x5fc   : > { %v1197_v61 = vpop.f32.mrb[5].mxu1  ;;  %1201 = vmatmul.mubr.msk.f32.vlgmr.msra.gmra.mrb[4].mxu0 %vm522_vm3, %v850_v60 }
 0x6cc   : > { %938 = sbr.rel (%p1124_p2) target bundleno = 1757 (0x6dd), region = 68 }
 0x6cf   : > { %v929_v63 = vpop.f32.mrb[4].mxu0 }
 0x6d0   : > { %v933_v0 = vadd.f32 %v929_v63, %v854_v62  ;;  %v1202_v1 = vpop.f32.mrb[5].mxu0 }
 0x6d2   : > { %934 = vst.msk [vmem:[#allocation5] sm:$0xff] %vm446_vm2, %v933_v0 }
 0x6d9   : > { %v939_v2 = vld [vmem:[#allocation5] sm:$0xff] }
 0x6da   : > { %v947_v4 = vadd.f32 %v1125_v3, %v939_v2 }
 0x6dc   : > { %948 = vst.msk [vmem:[%s375_s14] sm:$0xff] %vm446_vm2, %v947_v4 }
 0x6dd PF: > { %s1127_s22 = sshll.u32 %s1384_s9, 7  ;;  %s964_s20 = sshll.u32 %s375_s14, 4  ;;  %s965_s20 = int_to_ptr.vmem [resolvable:$true] %s964_s20 }
 0x6de   : > { %s1609_s30 = scalar_lea.hbm %s1668_s8, %s1127_s22  ;;  %s1689_s24 = sand.u32 1, %s1372_s28  }
 0x6df   : > { %s950_s13 = scalar_lea.sflag [#allocation7], %s1689_s24  ;;  %s1302_s26 = scalar_lea.vmem %s965_s20, 128 }
 0x6e0   : > { %p1303_p4 = scmp.ne.s32.totalorder %s965_s20, %s1302_s26  ;;  %s1402_s29 = smov [#allocation6]  }
 0x6e1   : > { %s1306_s10 = sshll.u32 %s1402_s29, 4  ;;  %s1307_s10 = int_to_ptr.vmem [resolvable:$false] %s1306_s10 }
 0x6e2   : > { %p1304_p5 = pnand %p1303_p4, %p1497_p3  ;;  %s1308_s12 = scalar_lea.vmem %s1307_s10, 256 }
 0x6e3   : > { %p1309_p7 = scmp.lt.s32.totalorder %s965_s20, %s1307_s10  ;;  %p1310_p8 = scmp.lt.s32.totalorder %s1308_s12, %s1302_s26 }
 0x6e4   : > { %p1305_p6 = pneg %p1304_p5 }
 0x6e5   : > { %p1311_p10 = por %p1310_p8, %p1309_p7 }
 0x6e7   : > { %p1312_p11 = pnand %p1311_p10, %p1305_p6 }
 0x6e9   : > { %1315 = shalt.err (!%p1312_p11)
}
 0x6ea   : > { %s1316_s9 = scalar_lea.hbm %s1609_s30, 128  ;;  %s1320_s15 = scalar_lea.hbm %s1668_s8, 256 }
 0x6eb   : > { %p1317_p12 = scmp.ne.s32.totalorder %s1609_s30, %s1316_s9  ;;  %p1321_p1 = scmp.lt.u32.totalorder %s1609_s30, %s1668_s8 }
 0x6ec   : > { %p1322_p2 = scmp.lt.u32.totalorder %s1320_s15, %s1316_s9  ;;  %p1324_p5 = scmp.lt.u32.totalorder %s1316_s9, %s1609_s30 }
 0x6ed   : > { %p1318_p13 = pnand %p1317_p12, %p1497_p3 }
 0x6ee   : > { %p1323_p4 = por %p1322_p2, %p1321_p1 }
 0x6ef   : > { %p1319_p0 = pneg %p1318_p13 }
 0x6f0   : > { %p1325_p6 = por %p1324_p5, %p1323_p4 }
 0x6f2   : > { %p1326_p7 = pnand %p1325_p6, %p1319_p0 }
 0x6f4   : > { %1329 = shalt.err (!%p1326_p7)
}
 0x6f5   : > { %1221 = dma.vmem_to_hbm [thread:$0]  (%p1497_p3), %s965_s20, 128, %s1609_s30, %s950_s13  }
 0x6f6 PF: > { %s1690_s18 = sld [smem:[#allocation13_spill]]  ;;  %s1691_s11 = sld [smem:[#allocation9_spill]] }
 0x6fc   : > { %p1227_p8 = scmp.ge.s32.totalorder %s1690_s18, 2  ;;  %s976_s22 = sand.u32 1, %s1691_s11  }
 0x6fd   : > { %s977_s25 = scalar_lea.sflag [#allocation7], %s976_s22 }
 0x6fe   : > { %p1224_p10 = pnand %p1227_p8, %p1507_p9 }
 0x700   : > { %1363 = dma.done.wait (!%p1224_p10), %s977_s25, 128  }
 0x701   : > { %1365 = vsyncadd (!%p1224_p10), %s977_s25, 4294967168  ;;  %s21_s12 = sadd.s32 1, %s1690_s18   ;;  %s1693_s19 = sld [smem:[#allocation10_spill]] }
 0x702   : > { %p18_p11 = scmp.ge.s32.totalorder %s21_s12, 18   ;;  %s1694_s29 = sld [smem:[#allocation17_spill]] }
 0x703   : > { %s1695_s30 = sld [smem:[#allocation11_spill]]  ;;  %s1696_s9 = sld [smem:[#allocation12_spill]] }
 0x704   : > { %s1697_s10 = sld [smem:[#allocation14_spill]]  ;;  %s1698_s11 = sld [smem:[#allocation15_spill]] }
 0x705   : > { %s1699_s27 = smov %s1372_s28  ;;  %20 = sbr.rel (!%p18_p11) target bundleno = 5 (0x5), region = 120 }
 0x707   : > { %s1700_s28 = smov %s1693_s19 }
 0x70c   :  { %982 = vsyncpa [#allocation7], 1 }
 0x70d   :  { %984 = vsyncpa [#allocation7 + $0x1], 1 }

</bundles_post_ra>
